<compile_context>
chip_gen: v5e
topology: v5e:2x2
jax: 0.10.0
libtpu: 0.0.40
codegen_flags: <defaults>
</compile_context>

<pallas_src>
import functools

import jax
import jax.numpy as jnp
from jax.experimental import pallas as pl
from jax.experimental.pallas import tpu as pltpu


def _round_up(x, m):
    return ((x + m - 1) // m) * m


def _choose_tile_b(b, n, itemsize):
    # Keep one input buffer <= ~8 MiB so double-buffering stays well under the
    # scoped VMEM limit on every generation (v5e 16 MiB default, v7x 64 MiB
    # physical). Cap at 1024 rows (~85% of HBM roofline per measured data).
    per_buffer_budget = 8 * 1024 * 1024
    rows_in_budget = per_buffer_budget // max(1, n * itemsize)
    rows_in_budget = max(8, (rows_in_budget // 8) * 8)
    tile = min(1024, rows_in_budget, _round_up(b, 8))
    return max(8, (tile // 8) * 8)


def _pairwise_margin_kernel(y_pred_ref, out_ref, *, margin, inv_denom, true_b, tile_b):
    pid = pl.program_id(0)

    # The output block index is constant across the grid, so the (1,1) f32
    # output stays resident in VMEM and serves as the running accumulator.
    @pl.when(pid == 0)
    def _init():
        out_ref[...] = jnp.zeros_like(out_ref)

    yp = y_pred_ref[...]                    # (tile_b, N), input dtype (bf16 stays bf16)
    pos = yp[:, 0:1]                        # keepdims read of lane 0, broadcast over lanes

    # Full-width hinge: no unaligned [:, 1:] slice -> straight VPU elementwise.
    hinge = jnp.maximum(margin + yp - pos, 0.0)

    # Mask out (a) column 0 (positive-vs-positive pair) and
    #          (b) rows past the true batch size in a padded last tile.
    col_ids = jax.lax.broadcasted_iota(jnp.int32, hinge.shape, 1)
    row_ids = jax.lax.broadcasted_iota(jnp.int32, hinge.shape, 0)
    valid = (col_ids >= 1) & ((pid * tile_b + row_ids) < true_b)
    masked = jnp.where(valid, hinge, jnp.zeros_like(hinge))

    # Widen only in the reduction; accumulate the per-tile partial sum.
    out_ref[...] += jnp.sum(masked, dtype=jnp.float32, keepdims=True)

    @pl.when(pid == pl.num_programs(0) - 1)
    def _finalize():
        # Divide by the true global count B*(N-1), never the per-tile shape.
        out_ref[...] = out_ref[...] * inv_denom


def pairwise_margin_loss(y_pred, y_true=None, margin=1.0, tile_b=None):
    """Pallas equivalent of PairwiseMarginLoss.forward. Returns a scalar f32."""
    del y_true  # unused in the reference forward
    b, n = y_pred.shape
    assert n >= 2, "need at least one negative column"
    # TODO(synk): for very large N where a (TILE_B, N) block cannot fit VMEM,
    # split the positive column out and add a grid axis over negative blocks.

    if tile_b is None:
        tile_b = _choose_tile_b(b, n, y_pred.dtype.itemsize)
    tile_b = max(8, (int(tile_b) // 8) * 8)
    num_tiles = pl.cdiv(b, tile_b)

    kernel = functools.partial(
        _pairwise_margin_kernel,
        margin=float(margin),
        inv_denom=1.0 / float(b * (n - 1)),
        true_b=b,
        tile_b=tile_b,
    )
    out = pl.pallas_call(
        kernel,
        out_shape=jax.ShapeDtypeStruct((1, 1), jnp.float32),
        grid=(num_tiles,),
        in_specs=[pl.BlockSpec((tile_b, n), lambda i: (i, 0))],
        out_specs=pl.BlockSpec((1, 1), lambda i: (0, 0)),
        compiler_params=pltpu.CompilerParams(
            dimension_semantics=("arbitrary",),  # accumulator output -> serial axis
            vmem_limit_bytes=32 * 1024 * 1024,
        ),
    )(y_pred)
    return out[0, 0]


if __name__ == "__main__":
    key = jax.random.PRNGKey(0)
    k1, k2, k3 = jax.random.split(key, 3)

    def ref_loss(yp, margin):
        pos = yp[:, 0:1].astype(jnp.float32)
        neg = yp[:, 1:].astype(jnp.float32)
        return jnp.mean(jnp.maximum(margin + neg - pos, 0.0))

    # Case 1: small shape matching the module convention (1 positive + 8 negatives).
    y_pred1 = jax.random.normal(k1, (8, 9), dtype=jnp.float32)
    y_true1 = jax.random.bernoulli(k2, 0.5, (8, 9)).astype(jnp.float32)
    loss1 = jax.block_until_ready(pairwise_margin_loss(y_pred1, y_true1, margin=1.0))
    assert jnp.allclose(loss1, ref_loss(y_pred1, 1.0), atol=1e-6, rtol=1e-6), (
        loss1, ref_loss(y_pred1, 1.0))

    # Case 2: multi-tile grid with a padded last tile (batch=20, forced tile_b=8),
    # exercising the row mask and the global-denominator handling.
    y_pred2 = jax.random.normal(k3, (20, 9), dtype=jnp.float32)
    loss2 = jax.block_until_ready(pairwise_margin_loss(y_pred2, None, margin=0.5, tile_b=8))
    assert jnp.allclose(loss2, ref_loss(y_pred2, 0.5), atol=1e-6, rtol=1e-6), (
        loss2, ref_loss(y_pred2, 0.5))

    print("KERNEL_OK")
</pallas_src>

<mosaic_0001>
module attributes {stable_mosaic.version = 11 : i64} {
  func.func @_pairwise_margin_kernel(%arg0: i32, %arg1: memref<8x9xf32, #tpu.memory_space<vmem>>, %arg2: memref<1x1xf32, #tpu.memory_space<vmem>>) attributes {dimension_semantics = [#tpu.dimension_semantics<arbitrary>], iteration_bounds = array<i64: 1>, scalar_prefetch = 0 : i64, scratch_operands = 0 : i64, tpu.core_type = #tpu.core_type<tc>, window_params = [{transform_indices = @transform_0, window_bounds = array<i64: 8, 9>}, {pipeline_mode = #tpu.pipeline_mode<synchronous>, transform_indices = @transform_1, window_bounds = array<i64: 1, 1>}]} {
    %c0_i32 = arith.constant 0 : i32
    %0 = arith.cmpi eq, %arg0, %c0_i32 : i32
    %1 = arith.extui %0 : i1 to i32
    %c0_i32_0 = arith.constant 0 : i32
    %2 = arith.cmpi ne, %1, %c0_i32_0 : i32
    scf.if %2 {
      %cst_12 = arith.constant 0.000000e+00 : f32
      %34 = vector.broadcast %cst_12 : f32 to vector<1x1xf32>
      %c0_13 = arith.constant 0 : index
      %c0_14 = arith.constant 0 : index
      %35 = vector.load %arg2[%c0_13, %c0_14] : memref<1x1xf32, #tpu.memory_space<vmem>>, vector<1x1xf32>
      tpu.vector_store %arg2[%c0_13, %c0_14], %34 {strides = array<i32>} : memref<1x1xf32, #tpu.memory_space<vmem>>, vector<1x1xf32>,
    } else {
    }
    %c0 = arith.constant 0 : index
    %c0_1 = arith.constant 0 : index
    %3 = vector.load %arg1[%c0, %c0_1] : memref<8x9xf32, #tpu.memory_space<vmem>>, vector<8x9xf32>
    %4 = vector.extract_strided_slice %3 {offsets = [0, 0], sizes = [8, 1], strides = [1, 1]} : vector<8x9xf32> to vector<8x1xf32>
    %cst = arith.constant 1.000000e+00 : f32
    %5 = vector.broadcast %cst : f32 to vector<8x9xf32>
    %6 = arith.addf %5, %3 : vector<8x9xf32>
    %7 = vector.broadcast %4 : vector<8x1xf32> to vector<8x9xf32>
    %8 = arith.subf %6, %7 : vector<8x9xf32>
    %cst_2 = arith.constant 0.000000e+00 : f32
    %9 = vector.broadcast %cst_2 : f32 to vector<8x9xf32>
    %10 = arith.maximumf %8, %9 : vector<8x9xf32>
    %11 = tpu.iota {dimensions = array<i32: 1>} : vector<8x9xi32>
    %12 = tpu.iota {dimensions = array<i32: 0>} : vector<8x9xi32>
    %c1_i32 = arith.constant 1 : i32
    %13 = vector.broadcast %c1_i32 : i32 to vector<8x9xi32>
    %14 = arith.cmpi sge, %11, %13 : vector<8x9xi32>
    %c8_i32 = arith.constant 8 : i32
    %15 = arith.muli %arg0, %c8_i32 : i32
    %16 = vector.broadcast %15 : i32 to vector<8x9xi32>
    %17 = arith.addi %16, %12 : vector<8x9xi32>
    %c8_i32_3 = arith.constant 8 : i32
    %18 = vector.broadcast %c8_i32_3 : i32 to vector<8x9xi32>
    %19 = arith.cmpi slt, %17, %18 : vector<8x9xi32>
    %20 = arith.andi %14, %19 : vector<8x9xi1>
    %cst_4 = arith.constant 0.000000e+00 : f32
    %21 = vector.broadcast %cst_4 : f32 to vector<8x9xf32>
    %22 = arith.select %20, %10, %21 : vector<8x9xi1>, vector<8x9xf32>
    %c0_5 = arith.constant 0 : index
    %c0_6 = arith.constant 0 : index
    %23 = vector.load %arg2[%c0_5, %c0_6] : memref<1x1xf32, #tpu.memory_space<vmem>>, vector<1x1xf32>
    %24 = vector.shape_cast %22 : vector<8x9xf32> to vector<1x8x9xf32>
    %cst_7 = arith.constant dense<0.000000e+00> : vector<1xf32>
    %25 = vector.multi_reduction <add>, %24, %cst_7 [1, 2] : vector<1x8x9xf32> to vector<1xf32>
    %26 = vector.shape_cast %25 : vector<1xf32> to vector<1x1x1xf32>
    %27 = vector.extract %26[0, 0, 0] : f32 from vector<1x1x1xf32>
    %28 = vector.broadcast %27 : f32 to vector<1x1xf32>
    %29 = arith.addf %23, %28 : vector<1x1xf32>
    %c0_8 = arith.constant 0 : index
    %c0_9 = arith.constant 0 : index
    %30 = vector.load %arg2[%c0_8, %c0_9] : memref<1x1xf32, #tpu.memory_space<vmem>>, vector<1x1xf32>
    tpu.vector_store %arg2[%c0_8, %c0_9], %29 {strides = array<i32>} : memref<1x1xf32, #tpu.memory_space<vmem>>, vector<1x1xf32>,
    %c0_i32_10 = arith.constant 0 : i32
    %31 = arith.cmpi eq, %arg0, %c0_i32_10 : i32
    %32 = arith.extui %31 : i1 to i32
    %c0_i32_11 = arith.constant 0 : i32
    %33 = arith.cmpi ne, %32, %c0_i32_11 : i32
    scf.if %33 {
      %c0_12 = arith.constant 0 : index
      %c0_13 = arith.constant 0 : index
      %34 = vector.load %arg2[%c0_12, %c0_13] : memref<1x1xf32, #tpu.memory_space<vmem>>, vector<1x1xf32>
      %cst_14 = arith.constant 1.562500e-02 : f32
      %35 = vector.broadcast %cst_14 : f32 to vector<1x1xf32>
      %36 = arith.mulf %34, %35 : vector<1x1xf32>
      %c0_15 = arith.constant 0 : index
      %c0_16 = arith.constant 0 : index
      %37 = vector.load %arg2[%c0_15, %c0_16] : memref<1x1xf32, #tpu.memory_space<vmem>>, vector<1x1xf32>
      tpu.vector_store %arg2[%c0_15, %c0_16], %36 {strides = array<i32>} : memref<1x1xf32, #tpu.memory_space<vmem>>, vector<1x1xf32>,
    } else {
    }
    return
  }
  func.func @transform_0(%arg0: i32) -> (i32, i32) {
    %c0_i32 = arith.constant 0 : i32
    %c0_i32_0 = arith.constant 0 : i32
    return %arg0, %c0_i32 : i32, i32
  }
  func.func @transform_1(%arg0: i32) -> (i32, i32) {
    %c0_i32 = arith.constant 0 : i32
    %c0_i32_0 = arith.constant 0 : i32
    %c0_i32_1 = arith.constant 0 : i32
    return %c0_i32, %c0_i32_0 : i32, i32
  }
}

</mosaic_0001>

<bundles_post_ra>
// kernel: tpu_custom_call.1
= control target key start
LH: loop header
LB: loop body
LE: loop exit
PB: predicated region body
PF: predicated region fallthrough
CT: control target
= control target key end

     0   :  { %6 = vsyncpa [#allocation3], 0  ;;  %s170_s0 = inlined_call_operand.hbm [shape: f32[8,9], index: 0, kind: input, shape index: {}]   ;;  %s171_s1 = inlined_call_operand.hbm [shape: f32[1,1], index: 1, kind: output, shape index: {}]  }
   0x1   :  { %7 = vsyncpa [#allocation4], 0  ;;  %s13_s8 = sshll.u32 %s170_s0, 4  ;;  %s147_s9 = smov [#allocation2]   ;;  %s14_s8 = int_to_ptr.hbm [resolvable:$true] %s13_s8 }
   0x2   :  { %s15_s10 = sshll.u32 %s147_s9, 4  ;;  %s16_s10 = int_to_ptr.vmem [resolvable:$true] %s15_s10 }
   0x3   :  { %18 = dma.hbm_to_vmem [thread:$0]  %s14_s8, 128, %s16_s10, [#allocation3]  }
   0x4   :  { %143 = dma.done.wait [#allocation3], 128  }
   0x5   :  { %144 = vsyncadd [#allocation3], 4294967168  ;;  %vm27_vm0 = vcmask 0   ;;  %v148_v0 = vmov 0.0   ;;  %v149_v1 = vmov 0   ;;  %v29_v2 = vld [vmem:[#allocation2] sm:$0xff]  ;;  %v38_v3 = vlaneseq }
   0x6   :  { %28 = vst.msk [vmem:[#allocation5] sm:$0x1] %vm27_vm0, %v148_v0  ;;  %94 = vset.pattern.permute.xlu0 %v149_v1  ;;  %v30_v4 = vadd.f32 1.0, %v29_v2  ;;  %vm50_vm2 = vcmask 72704   ;;  %s150_s11 = smov [#allocation5]   ;;  %s78_s15 = sshll.u32 %s171_s1, 4  ;;  %s79_s15 = int_to_ptr.hbm [resolvable:$true] %s78_s15 }
   0x7   :  { %33 = vperm.xlu0 %94, %v29_v2   ;;  %v39_v5 = vand.u32 127, %v38_v3  ;;  %s76_s12 = sshll.u32 %s150_s11, 4  ;;  %s77_s12 = int_to_ptr.vmem [resolvable:$true] %s76_s12 }
   0x9   :  { %vm42_vm1 = vcmp.ge.s32.totalorder %v39_v5, 1 }
   0xd   :  { %v49_v18 = vld [vmem:[#allocation5] sm:$0x1] }
  0x79   :  { %v34_v6 = vpop.permute.xlu0 %33 }
  0x7a   :  { %v36_v7 = vsub.f32 %v30_v4, %v34_v6 }
  0x7c   :  { %v37_v8 = vmax.f32 %v36_v7, 0.0 }
  0x7e   :  { %v48_v9 = vsel %vm42_vm1, %v37_v8, 0.0 }
  0x7f   :  { %v51_v10 = vsel %vm50_vm2, %v48_v9, 0.0 }
  0x80   :  { %52 = vadd.xlane.f32.xlu0 %v51_v10 }
  0xf3   :  { %v53_v11 = vpop.xlane.xlu0 %52 }
  0xf4   :  { %v54_v12 = vrot.slane %v53_v11, 4 }
  0xf6   :  { %v55_v13 = vadd.f32 %v54_v12, %v53_v11 }
  0xf8   :  { %v56_v14 = vrot.slane %v55_v13, 2 }
  0xfa   :  { %v57_v15 = vadd.f32 %v56_v14, %v55_v13 }
  0xfc   :  { %v58_v16 = vrot.slane %v57_v15, 1 }
  0xfe   :  { %v59_v17 = vadd.f32 %v58_v16, %v57_v15 }
 0x100   :  { %88 = vpush %v59_v17 }
 0x131   :  { %s89_s0 = spop %88 }
 0x132   :  { %v61_v19 = vstv %s89_s0 }
 0x133   :  { %v62_v20 = vadd.f32 %v61_v19, %v49_v18 }
 0x135   :  { %64 = vst.msk [vmem:[#allocation5] sm:$0x1] %vm27_vm0, %v62_v20 }
 0x13c   :  { %v68_v21 = vld [vmem:[#allocation5] sm:$0x1] }
 0x13d   :  { %v69_v22 = vmul.f32 0.015625, %v68_v21 }
 0x13f   :  { %70 = vst.msk [vmem:[#allocation5] sm:$0x1] %vm27_vm0, %v69_v22 }
 0x140   :  { %81 = dma.vmem_to_hbm [thread:$0]  %s77_s12, 16, %s79_s15, [#allocation4]  }
 0x141   :  { %145 = dma.done.wait [#allocation4], 16  }
 0x142   :  { %146 = vsyncadd [#allocation4], 4294967280 }
 0x143   :  { %86 = vsyncpa [#allocation3], 1 }
 0x144   :  { %87 = vsyncpa [#allocation4], 1 }

</bundles_post_ra>
